<compile_context>
chip_gen: v5e
topology: v5e:2x2
jax: 0.10.0
libtpu: 0.0.40
codegen_flags: <defaults>
</compile_context>

<pallas_src>
import jax
import jax.numpy as jnp
from jax.experimental import pallas as pl
from jax.experimental.pallas import tpu as pltpu


def _block_tile_kernel(x_ref, o_ref):
    # x_ref: (TO, TB) tile of the (outer, block) view
    # o_ref: (TB, TO) tile of the (block, outer) blocked output
    # Block-level permute handled by the index_maps; only the intra-tile
    # transpose happens here (XLU), stores are lane-dense/unmasked.
    o_ref[...] = jnp.transpose(x_ref[...], (1, 0))


def _pick_tile(dim, cap=512, align=128):
    """Largest multiple of `align` that divides `dim` and is <= cap (None if impossible)."""
    if dim % align != 0:
        return None
    t = min(dim, cap)
    t -= t % align
    while t >= align:
        if dim % t == 0:
            return t
        t -= align
    return None


def block_param(param_flat, block_factor):
    """Equivalent of BlockingManager.block() for blocking_factors=[bf], permute=[1,0].

    (n,) -> view(outer, bf) -> permute(1, 0).contiguous() -> (bf, outer)
    """
    n = param_flat.shape[0]
    assert n % block_factor == 0, "Blocking factor doesn't divide dim evenly"
    outer = n // block_factor
    x2d = param_flat.reshape(outer, block_factor)  # the cheap .view() step

    to = _pick_tile(outer)          # output lane dim  -> multiple of 128
    tb = _pick_tile(block_factor)   # input  lane dim  -> multiple of 128
    if to is None or tb is None:
        # Tiny / unaligned parameter (e.g. the module's arange(10)): a Pallas
        # custom call would cost 100-1000x the useful work. Let XLA do (and
        # constant-fold) the transpose directly.
        return x2d.T

    grid = (block_factor // tb, outer // to)
    return pl.pallas_call(
        _block_tile_kernel,
        out_shape=jax.ShapeDtypeStruct((block_factor, outer), param_flat.dtype),
        grid=grid,
        # read block (oi, bi) of the (outer, bf) view ...
        in_specs=[pl.BlockSpec((to, tb), lambda bi, oi: (oi, bi))],
        # ... write block (bi, oi) of the (bf, outer) output; last dim `to` is a
        # multiple of 128, so writeback is unmasked, lane-dense vst.
        out_specs=pl.BlockSpec((tb, to), lambda bi, oi: (bi, oi)),
        compiler_params=pltpu.CompilerParams(
            dimension_semantics=("parallel", "parallel"),
            vmem_limit_bytes=64 << 20,
        ),
    )(x2d)


class TestModule:
    """JAX/Pallas analogue of the PyTorch TestModule."""

    def __init__(self):
        # Deterministic parameters, matching torch.arange initialization.
        self.param1 = jnp.arange(10.0, dtype=jnp.float32)   # BlockedParameter
        self._param1_blocking = ([5], [1, 0])                # (blocking_factors, permute)
        self.param2 = jnp.arange(3.0, dtype=jnp.float32)     # plain Parameter (unused)
        self._blocked = False
        # TODO(synk): state_dict save/load block/unblock hooks and the
        # BlockedTensor __torch_dispatch__ plumbing are framework metadata with
        # no kernel equivalent; only the block() data movement is implemented.

    def forward(self):
        if not self._blocked:
            bf = self._param1_blocking[0][0]
            self.param1 = block_param(self.param1, block_factor=bf)
            self._blocked = True
        return self.param1


if __name__ == "__main__":
    # 1) Module forward with its deterministic arange parameter
    #    (matches the PyTorch reference exactly; uses the constant-foldable path).
    mod = TestModule()
    out = jax.block_until_ready(mod.forward())
    ref = jnp.arange(10.0, dtype=jnp.float32).reshape(2, 5).T
    assert out.shape == (5, 2), out.shape
    assert out.dtype == jnp.float32, out.dtype
    assert jnp.allclose(out, ref), (out, ref)
    # Second call returns the cached blocked parameter (same as PyTorch .block()).
    out2 = mod.forward()
    assert out2.shape == (5, 2)

    # 2) Generalized blocked-layout Pallas kernel on a tile-aligned parameter
    #    (same block()/permute([1,0]) semantics, lane-dense tiles, grid > 1).
    key = jax.random.PRNGKey(0)
    bf, outer = 1024, 256                      # 256 KiB f32 parameter, grid = (2, 1)
    big = jax.random.normal(key, (outer * bf,), dtype=jnp.float32)
    blocked = jax.block_until_ready(block_param(big, block_factor=bf))
    ref_big = big.reshape(outer, bf).T
    assert blocked.shape == (bf, outer), blocked.shape
    assert jnp.allclose(blocked, ref_big)

    print("KERNEL_OK")
</pallas_src>

<mosaic_0001>
module attributes {stable_mosaic.version = 11 : i64} {
  func.func @_block_tile_kernel(%arg0: i32, %arg1: i32, %arg2: memref<256x512xf32, #tpu.memory_space<vmem>>, %arg3: memref<512x256xf32, #tpu.memory_space<vmem>>) attributes {dimension_semantics = [#tpu.dimension_semantics<parallel>, #tpu.dimension_semantics<parallel>], iteration_bounds = array<i64: 2, 1>, scalar_prefetch = 0 : i64, scratch_operands = 0 : i64, tpu.core_type = #tpu.core_type<tc>, window_params = [{transform_indices = @transform_0, window_bounds = array<i64: 256, 512>}, {transform_indices = @transform_1, window_bounds = array<i64: 512, 256>}]} {
    %c0 = arith.constant 0 : index
    %c0_0 = arith.constant 0 : index
    %0 = vector.load %arg2[%c0, %c0_0] : memref<256x512xf32, #tpu.memory_space<vmem>>, vector<256x512xf32>
    %1 = tpu.transpose %0, [1, 0] : vector<256x512xf32> -> vector<512x256xf32>
    %c0_1 = arith.constant 0 : index
    %c0_2 = arith.constant 0 : index
    %2 = vector.load %arg3[%c0_1, %c0_2] : memref<512x256xf32, #tpu.memory_space<vmem>>, vector<512x256xf32>
    tpu.vector_store %arg3[%c0_1, %c0_2], %1 {strides = array<i32>} : memref<512x256xf32, #tpu.memory_space<vmem>>, vector<512x256xf32>,
    return
  }
  func.func @transform_0(%arg0: i32, %arg1: i32) -> (i32, i32) {
    %c0_i32 = arith.constant 0 : i32
    return %arg1, %arg0 : i32, i32
  }
  func.func @transform_1(%arg0: i32, %arg1: i32) -> (i32, i32) {
    %c0_i32 = arith.constant 0 : i32
    return %arg0, %arg1 : i32, i32
  }
}

</mosaic_0001>

<bundles_post_ra>
// kernel: tpu_custom_call.1
= control target key start
LH: loop header
LB: loop body
LE: loop exit
PB: predicated region body
PF: predicated region fallthrough
CT: control target
= control target key end

     0   :  { %6 = vsyncpa [#allocation3], 0  ;;  %s1378_s0 = inlined_call_operand.hbm [shape: f32[256,1024], index: 0, kind: input, shape index: {}]   ;;  %s1379_s1 = inlined_call_operand.hbm [shape: f32[1024,256], index: 1, kind: output, shape index: {}]  }
   0x1   :  { %8 = vsyncpa [#allocation3 + $0x1], 0 }
   0x2   :  { %9 = vsyncpa [#allocation4], 0 }
   0x3   :  { %11 = vsyncpa [#allocation4 + $0x1], 0  ;;  %s993_s6 = smov 0   ;;  %s995_s7 = smov 0  }
   0x4   :  { %s997_s8 = smov 0   ;;  %s999_s9 = smov 0  }
   0x5   :  { %s1001_s10 = smov 0   ;;  %s1003_s11 = smov 0  }
   0x6 LB: > { %s778_s12 = sadd.s32 4294967295, %s976_s11   ;;  %s779_s13 = sadd.s32 4294967294, %s976_s11   ;;  %s976_s11 = sphi %s1003_s11, %s17_s11   ;;  %s972_s10 = sphi %s1001_s10, %s1388_s10   ;;  %s968_s9 = sphi %s999_s9, %s1387_s9   ;;  %s964_s8 = sphi %s997_s8, %s1386_s8   ;;  %s960_s7 = sphi %s995_s7, %s1385_s7   ;;  %s956_s6 = sphi %s993_s6, %s1384_s6  }
   0x7   : > { %s29_s14 = sadd.s32 1, %s972_s10  ;;  %s38_s15 = sadd.s32 1, %s964_s8 }
   0x8   : > { %p31_p0 = scmp.ge.s32.totalorder %s29_s14, 2  ;;  %p45_p1 = scmp.ne.s32.totalorder %s964_s8, %s960_s7 }
   0x9   : > { %p46_p2 = scmp.eq.s32.totalorder %s976_s11, 0  ;;  %p51_p3 = scmp.ne.s32.totalorder %s960_s7, %s956_s6 }
   0xa   : > { %s1390_s14 = smov (%p31_p0, %s29_s14), 0  ;;  %p52_p5 = scmp.eq.s32.totalorder %s778_s12, 0 }
   0xb   : > { %p1034_p4 = por %p46_p2, %p45_p1  ;;  %s34_s17 = ssub.s32 %s972_s10, %s1390_s14 }
   0xc   : > { %p77_p6 = scmp.eq.s32.totalorder %s778_s12, 1  ;;  %p36_p7 = scmp.eq.s32.totalorder %s34_s17, 0 }
   0xd   : > { %p1040_p8 = por %p52_p5, %p51_p3  ;;  %p83_p10 = scmp.eq.s32.totalorder %s779_s13, 1 }
   0xe   : > { %p1044_p9 = por %p77_p6, %p45_p1  ;;  %p781_p12 = scmp.ge.s32.totalorder %s976_s11, 2 }
   0xf   : > { %s1049_s20 = scalar_select %p36_p7, %s964_s8, %s38_s15  }
  0x10   : > { %p1051_p11 = por %p83_p10, %p51_p3  ;;  %p809_p13 = scmp.lt.s32.totalorder %s976_s11, 2 }
  0x11   : > { %s103_s22 = sand.u32 1, %s964_s8   ;;  %s794_s24 = sshll.u32 %s972_s10, 5 }
  0x12   : > { %s782_s23 = sshll.u32 %s103_s22, 10  ;;  %s115_s27 = scalar_lea.hbm %s1378_s0, %s794_s24 }
  0x13   : > { %s107_s28 = scalar_lea.vmem [#allocation2], %s782_s23  ;;  %s116_s30 = sshll.u32 %s115_s27, 4  ;;  %s117_s30 = int_to_ptr.hbm [resolvable:$true] %s116_s30 }
  0x14   : > { %s118_s29 = sshll.u32 %s107_s28, 4  ;;  %p802_p0 = pnand %p809_p13, %p1034_p4  ;;  %s119_s29 = int_to_ptr.vmem [resolvable:$true] %s118_s29 }
  0x15   : > { %s104_s2 = scalar_lea.sflag [#allocation3], %s103_s22  ;;  %s978_s3 = smov 1024  }
  0x16   : > { %s979_s4 = smov 512   ;;  %s980_s5 = smov 32  }
  0x17   : > { %804 = dma.hbm_to_vmem [thread:$0]  (!%p802_p0), %s117_s30, 16384, %s119_s29, %s104_s2, %s978_s3, %s979_s4, %s980_s5  }
  0x18   : > { %p785_p1 = scmp.ge.s32.totalorder %s976_s11, 1  ;;  %p126_p2 = scmp.lt.s32.totalorder %s976_s11, 3 }
  0x1a   : > { %p127_p3 = pnand %p785_p1, %p126_p2 }
  0x1b   : > { %s1067_s12 = sand.u32 (!%p127_p3), 1, %s960_s7  }
  0x1c   : > { %130 = sbr.rel (%p127_p3) target bundleno = 581 (0x245), region = 24  ;;  %s786_s13 = sshll.u32 (!%p127_p3), %s1067_s12, 10 }
  0x1d   : > { %s133_s15 = scalar_lea.sflag (!%p127_p3), [#allocation3], %s1067_s12  ;;  %s1073_s16 = scalar_lea.vmem (!%p127_p3), [#allocation2], %s786_s13 }
  0x21   : > { %947 = dma.done.wait (%p1040_p8), %s133_s15, 16384  }
  0x22   : > { %949 = vsyncadd (%p1040_p8), %s133_s15, 4294950912  ;;  %v161_v0 = vld [vmem:[%s1073_s16 + $0x8] sm:$0xff]  ;;  %v160_v1 = vld [vmem:[%s1073_s16] sm:$0xff]  ;;  %s1131_s17 = scalar_lea.vmem [#allocation5], %s786_s13  ;;  %s796_s18 = sshll.u32 %s968_s9, 10 }
  0x23   : > { %320 = vxpose.xlu1.b32.start [1/16] %v161_v0, 128  ;;  %288 = vxpose.xlu0.b32.start [1/16] %v160_v1, 128  ;;  %v165_v2 = vld [vmem:[%s1073_s16 + $0x28] sm:$0xff]  ;;  %v164_v3 = vld [vmem:[%s1073_s16 + $0x20] sm:$0xff]  ;;  %v162_v28 = vld [vmem:[%s1073_s16 + $0x10] sm:$0xff]  ;;  %s687_s24 = scalar_lea.hbm %s1379_s1, %s796_s18  ;;  %s688_s25 = sshll.u32 %s1131_s17, 4  ;;  %s689_s25 = int_to_ptr.vmem [resolvable:$true] %s688_s25 }
  0x24   : > { %v169_v4 = vld [vmem:[%s1073_s16 + $0x48] sm:$0xff]  ;;  %v168_v5 = vld [vmem:[%s1073_s16 + $0x40] sm:$0xff]  ;;  %352 = vxpose.xlu2.b32.start [1/16] %v162_v28, 128  ;;  %v166_v31 = vld [vmem:[%s1073_s16 + $0x30] sm:$0xff]  ;;  %s690_s26 = sshll.u32 %s687_s24, 4  ;;  %s673_s27 = scalar_lea.sflag [#allocation4], %s1067_s12  ;;  %s691_s26 = int_to_ptr.hbm [resolvable:$true] %s690_s26 }
  0x25   : > { %v173_v6 = vld [vmem:[%s1073_s16 + $0x68] sm:$0xff]  ;;  %v172_v7 = vld [vmem:[%s1073_s16 + $0x60] sm:$0xff]  ;;  %v170_v34 = vld [vmem:[%s1073_s16 + $0x50] sm:$0xff]  ;;  %s908_s28 = sshra.s32 %s691_s26, 4  ;;  %s914_s2 = scalar_lea.hbm %s1379_s1, 2048  ;;  %s909_s28 = int_to_ptr.hbm [resolvable:$true] %s908_s28 }
  0x26   : > { %v177_v8 = vld [vmem:[%s1073_s16 + $0x88] sm:$0xff]  ;;  %v176_v9 = vld [vmem:[%s1073_s16 + $0x80] sm:$0xff]  ;;  %v163_v36 = vld [vmem:[%s1073_s16 + $0x18] sm:$0xff]  ;;  %s910_s9 = scalar_lea.hbm %s909_s28, 1024  ;;  %p915_p7 = scmp.lt.s32.totalorder %s909_s28, %s1379_s1 }
  0x27   : > { %v181_v10 = vld [vmem:[%s1073_s16 + $0xa8] sm:$0xff]  ;;  %v180_v11 = vld [vmem:[%s1073_s16 + $0xa0] sm:$0xff]  ;;  %v174_v37 = vld [vmem:[%s1073_s16 + $0x70] sm:$0xff]  ;;  %p911_p4 = scmp.ne.s32.totalorder %s909_s28, %s910_s9  ;;  %p916_p8 = scmp.lt.s32.totalorder %s914_s2, %s910_s9 }
  0x28   : > { %v185_v12 = vld [vmem:[%s1073_s16 + $0xc8] sm:$0xff]  ;;  %v184_v13 = vld [vmem:[%s1073_s16 + $0xc0] sm:$0xff]  ;;  %v167_v39 = vld [vmem:[%s1073_s16 + $0x38] sm:$0xff] }
  0x29   : > { %v189_v14 = vld [vmem:[%s1073_s16 + $0xe8] sm:$0xff]  ;;  %v188_v15 = vld [vmem:[%s1073_s16 + $0xe0] sm:$0xff]  ;;  %v178_v40 = vld [vmem:[%s1073_s16 + $0x90] sm:$0xff]  ;;  %p912_p5 = pnand %p911_p4, %p1044_p9  ;;  %p917_p10 = por %p916_p8, %p915_p7 }
  0x2a   : > { %v193_v16 = vld [vmem:[%s1073_s16 + $0x108] sm:$0xff]  ;;  %v192_v17 = vld [vmem:[%s1073_s16 + $0x100] sm:$0xff]  ;;  %v171_v42 = vld [vmem:[%s1073_s16 + $0x58] sm:$0xff] }
  0x2b   : > { %321 = vxpose.xlu1.b32.cont [2/16] %v165_v2, 128  ;;  %289 = vxpose.xlu0.b32.cont [2/16] %v164_v3, 128  ;;  %v197_v18 = vld [vmem:[%s1073_s16 + $0x128] sm:$0xff]  ;;  %v196_v19 = vld [vmem:[%s1073_s16 + $0x120] sm:$0xff]  ;;  %v182_v43 = vld [vmem:[%s1073_s16 + $0xb0] sm:$0xff]  ;;  %p913_p6 = pneg %p912_p5 }
  0x2c   : > { %v201_v20 = vld [vmem:[%s1073_s16 + $0x148] sm:$0xff]  ;;  %v200_v21 = vld [vmem:[%s1073_s16 + $0x140] sm:$0xff]  ;;  %353 = vxpose.xlu2.b32.cont [2/16] %v166_v31, 128  ;;  %v175_v45 = vld [vmem:[%s1073_s16 + $0x78] sm:$0xff] }
  0x2d   : > { %v205_v22 = vld [vmem:[%s1073_s16 + $0x168] sm:$0xff]  ;;  %v204_v23 = vld [vmem:[%s1073_s16 + $0x160] sm:$0xff]  ;;  %v186_v46 = vld [vmem:[%s1073_s16 + $0xd0] sm:$0xff]  ;;  %p918_p13 = pnand %p917_p10, %p913_p6 }
  0x2e   : > { %v209_v24 = vld [vmem:[%s1073_s16 + $0x188] sm:$0xff]  ;;  %v208_v25 = vld [vmem:[%s1073_s16 + $0x180] sm:$0xff]  ;;  %v179_v48 = vld [vmem:[%s1073_s16 + $0x98] sm:$0xff] }
  0x2f   : > { %v213_v26 = vld [vmem:[%s1073_s16 + $0x1a8] sm:$0xff]  ;;  %v212_v27 = vld [vmem:[%s1073_s16 + $0x1a0] sm:$0xff]  ;;  %v190_v49 = vld [vmem:[%s1073_s16 + $0xf0] sm:$0xff] }
  0x30   : > { %v217_v29 = vld [vmem:[%s1073_s16 + $0x1c8] sm:$0xff]  ;;  %v216_v30 = vld [vmem:[%s1073_s16 + $0x1c0] sm:$0xff]  ;;  %v183_v53 = vld [vmem:[%s1073_s16 + $0xb8] sm:$0xff] }
  0x31   : > { %v221_v32 = vld [vmem:[%s1073_s16 + $0x1e8] sm:$0xff]  ;;  %v220_v33 = vld [vmem:[%s1073_s16 + $0x1e0] sm:$0xff]  ;;  %v194_v54 = vld [vmem:[%s1073_s16 + $0x110] sm:$0xff] }
  0x32   : > { %v224_v35 = vld [vmem:[%s1073_s16 + $0x200] sm:$0xff]  ;;  %v187_v58 = vld [vmem:[%s1073_s16 + $0xd8] sm:$0xff]  ;;  %v198_v59 = vld [vmem:[%s1073_s16 + $0x130] sm:$0xff] }
  0x33   : > { %322 = vxpose.xlu1.b32.cont [3/16] %v169_v4, 128  ;;  %290 = vxpose.xlu0.b32.cont [3/16] %v168_v5, 128  ;;  %v228_v38 = vld [vmem:[%s1073_s16 + $0x220] sm:$0xff]  ;;  %v191_v63 = vld [vmem:[%s1073_s16 + $0xf8] sm:$0xff]  ;;  %v202_v0 = vld [vmem:[%s1073_s16 + $0x150] sm:$0xff] }
  0x34   : > { %354 = vxpose.xlu2.b32.cont [3/16] %v170_v34, 128  ;;  %v232_v41 = vld [vmem:[%s1073_s16 + $0x240] sm:$0xff]  ;;  %v195_v4 = vld [vmem:[%s1073_s16 + $0x118] sm:$0xff]  ;;  %v206_v5 = vld [vmem:[%s1073_s16 + $0x170] sm:$0xff] }
  0x35   : > { %v236_v44 = vld [vmem:[%s1073_s16 + $0x260] sm:$0xff]  ;;  %v219_v34 = vld [vmem:[%s1073_s16 + $0x1d8] sm:$0xff] }
  0x36   : > { %v240_v47 = vld [vmem:[%s1073_s16 + $0x280] sm:$0xff] }
  0x37   : > { %v244_v52 = vld [vmem:[%s1073_s16 + $0x2a0] sm:$0xff] }
  0x38   : > { %v248_v57 = vld [vmem:[%s1073_s16 + $0x2c0] sm:$0xff] }
  0x39   : > { %v252_v62 = vld [vmem:[%s1073_s16 + $0x2e0] sm:$0xff] }
  0x3a   : > { %v256_v3 = vld [vmem:[%s1073_s16 + $0x300] sm:$0xff] }
  0x3b   : > { %323 = vxpose.xlu1.b32.cont [4/16] %v173_v6, 128  ;;  %291 = vxpose.xlu0.b32.cont [4/16] %v172_v7, 128  ;;  %v276_v28 = vld [vmem:[%s1073_s16 + $0x3a0] sm:$0xff] }
  0x3c   : > { %355 = vxpose.xlu2.b32.cont [4/16] %v174_v37, 128 }
  0x43   : > { %324 = vxpose.xlu1.b32.cont [5/16] %v177_v8, 128  ;;  %292 = vxpose.xlu0.b32.cont [5/16] %v176_v9, 128  ;;  %v260_v8 = vld [vmem:[%s1073_s16 + $0x320] sm:$0xff]  ;;  %v199_v9 = vld [vmem:[%s1073_s16 + $0x138] sm:$0xff] }
  0x44   : > { %356 = vxpose.xlu2.b32.cont [5/16] %v178_v40, 128  ;;  %v233_v40 = vld [vmem:[%s1073_s16 + $0x248] sm:$0xff] }
  0x4b   : > { %325 = vxpose.xlu1.b32.cont [6/16] %v181_v10, 128  ;;  %293 = vxpose.xlu0.b32.cont [6/16] %v180_v11, 128  ;;  %v210_v10 = vld [vmem:[%s1073_s16 + $0x190] sm:$0xff] }
  0x4c   : > { %357 = vxpose.xlu2.b32.cont [6/16] %v182_v43, 128  ;;  %v227_v43 = vld [vmem:[%s1073_s16 + $0x218] sm:$0xff] }
  0x53   : > { %326 = vxpose.xlu1.b32.cont [7/16] %v185_v12, 128  ;;  %294 = vxpose.xlu0.b32.cont [7/16] %v184_v13, 128  ;;  %v264_v13 = vld [vmem:[%s1073_s16 + $0x340] sm:$0xff] }
  0x54   : > { %358 = vxpose.xlu2.b32.cont [7/16] %v186_v46, 128 }
  0x5b   : > { %327 = vxpose.xlu1.b32.cont [8/16] %v189_v14, 128  ;;  %295 = vxpose.xlu0.b32.cont [8/16] %v188_v15, 128  ;;  %v203_v14 = vld [vmem:[%s1073_s16 + $0x158] sm:$0xff]  ;;  %v214_v15 = vld [vmem:[%s1073_s16 + $0x1b0] sm:$0xff] }
  0x5c   : > { %359 = vxpose.xlu2.b32.cont [8/16] %v190_v49, 128  ;;  %v231_v49 = vld [vmem:[%s1073_s16 + $0x238] sm:$0xff] }
  0x63   : > { %328 = vxpose.xlu1.b32.cont [9/16] %v193_v16, 128  ;;  %296 = vxpose.xlu0.b32.cont [9/16] %v192_v17, 128 }
  0x64   : > { %360 = vxpose.xlu2.b32.cont [9/16] %v194_v54, 128 }
  0x6b   : > { %329 = vxpose.xlu1.b32.cont [10/16] %v197_v18, 128  ;;  %297 = vxpose.xlu0.b32.cont [10/16] %v196_v19, 128  ;;  %v268_v18 = vld [vmem:[%s1073_s16 + $0x360] sm:$0xff]  ;;  %v207_v19 = vld [vmem:[%s1073_s16 + $0x178] sm:$0xff] }
  0x6c   : > { %361 = vxpose.xlu2.b32.cont [10/16] %v198_v59, 128 }
  0x73   : > { %330 = vxpose.xlu1.b32.cont [11/16] %v201_v20, 128  ;;  %298 = vxpose.xlu0.b32.cont [11/16] %v200_v21, 128  ;;  %v218_v20 = vld [vmem:[%s1073_s16 + $0x1d0] sm:$0xff] }
  0x74   : > { %362 = vxpose.xlu2.b32.cont [11/16] %v202_v0, 128 }
  0x7b   : > { %331 = vxpose.xlu1.b32.cont [12/16] %v205_v22, 128  ;;  %299 = vxpose.xlu0.b32.cont [12/16] %v204_v23, 128  ;;  %v272_v23 = vld [vmem:[%s1073_s16 + $0x380] sm:$0xff] }
  0x7c   : > { %363 = vxpose.xlu2.b32.cont [12/16] %v206_v5, 128  ;;  %v253_v5 = vld [vmem:[%s1073_s16 + $0x2e8] sm:$0xff] }
  0x83   : > { %332 = vxpose.xlu1.b32.cont [13/16] %v209_v24, 128  ;;  %300 = vxpose.xlu0.b32.cont [13/16] %v208_v25, 128  ;;  %v211_v24 = vld [vmem:[%s1073_s16 + $0x198] sm:$0xff]  ;;  %v222_v25 = vld [vmem:[%s1073_s16 + $0x1f0] sm:$0xff] }
  0x84   : > { %364 = vxpose.xlu2.b32.cont [13/16] %v210_v10, 128  ;;  %v246_v10 = vld [vmem:[%s1073_s16 + $0x2b0] sm:$0xff] }
  0x8b   : > { %333 = vxpose.xlu1.b32.cont [14/16] %v213_v26, 128  ;;  %301 = vxpose.xlu0.b32.cont [14/16] %v212_v27, 128 }
  0x8c   : > { %365 = vxpose.xlu2.b32.cont [14/16] %v214_v15, 128  ;;  %v251_v15 = vld [vmem:[%s1073_s16 + $0x2d8] sm:$0xff] }
  0x93   : > { %334 = vxpose.xlu1.b32.cont [15/16] %v217_v29, 128  ;;  %302 = vxpose.xlu0.b32.cont [15/16] %v216_v30, 128  ;;  %v215_v29 = vld [vmem:[%s1073_s16 + $0x1b8] sm:$0xff]  ;;  %v225_v30 = vld [vmem:[%s1073_s16 + $0x208] sm:$0xff] }
  0x94   : > { %366 = vxpose.xlu2.b32.cont [15/16] %v218_v20, 128 }
  0x9b   : > { %335 = vxpose.xlu1.b32.end [16/16] %v221_v32, 128  ;;  %303 = vxpose.xlu0.b32.end [16/16] %v220_v33, 128  ;;  %v280_v33 = vld [vmem:[%s1073_s16 + $0x3c0] sm:$0xff] }
  0x9c   : > { %367 = vxpose.xlu2.b32.end [16/16] %v222_v25, 128 }
  0xa3   : > { %416 = vxpose.xlu1.b32.start [1/16] %v224_v35, 128  ;;  %384 = vxpose.xlu0.b32.start [1/16] %v163_v36, 128  ;;  %v229_v35 = vld [vmem:[%s1073_s16 + $0x228] sm:$0xff] }
  0xa4   : > { %448 = vxpose.xlu2.b32.start [1/16] %v225_v30, 128 }
  0xab   : > { %417 = vxpose.xlu1.b32.cont [2/16] %v228_v38, 128  ;;  %385 = vxpose.xlu0.b32.cont [2/16] %v167_v39, 128  ;;  %v284_v38 = vld [vmem:[%s1073_s16 + $0x3e0] sm:$0xff]  ;;  %v223_v39 = vld [vmem:[%s1073_s16 + $0x1f8] sm:$0xff] }
  0xac   : > { %449 = vxpose.xlu2.b32.cont [2/16] %v229_v35, 128  ;;  %v273_v35 = vld [vmem:[%s1073_s16 + $0x388] sm:$0xff] }
  0xb3   : > { %418 = vxpose.xlu1.b32.cont [3/16] %v232_v41, 128  ;;  %386 = vxpose.xlu0.b32.cont [3/16] %v171_v42, 128 }
  0xb4   : > { %450 = vxpose.xlu2.b32.cont [3/16] %v233_v40, 128  ;;  %v266_v40 = vld [vmem:[%s1073_s16 + $0x350] sm:$0xff] }
  0xbb   : > { %419 = vxpose.xlu1.b32.cont [4/16] %v236_v44, 128  ;;  %387 = vxpose.xlu0.b32.cont [4/16] %v175_v45, 128  ;;  %v226_v44 = vld [vmem:[%s1073_s16 + $0x210] sm:$0xff]  ;;  %v237_v45 = vld [vmem:[%s1073_s16 + $0x268] sm:$0xff] }
  0xbc   : > { %451 = vxpose.xlu2.b32.cont [4/16] %v237_v45, 128  ;;  %v271_v45 = vld [vmem:[%s1073_s16 + $0x378] sm:$0xff] }
  0xbd   : > { %v368_v46 = vpop.trf.xlu2 }
  0xbe   : > { %608 = vst [vmem:[%s1131_s17 + $0x200] sm:$0xff] %v368_v46  ;;  %v270_v46 = vld [vmem:[%s1073_s16 + $0x370] sm:$0xff] }
  0xc3   : > { %420 = vxpose.xlu1.b32.cont [5/16] %v240_v47, 128  ;;  %388 = vxpose.xlu0.b32.cont [5/16] %v179_v48, 128 }
  0xc7   : > { %v336_v50 = vpop.trf.xlu1  ;;  %v304_v51 = vpop.trf.xlu0 }
  0xc8   : > { %576 = vst [vmem:[%s1131_s17 + $0x100] sm:$0xff] %v336_v50  ;;  %v230_v50 = vld [vmem:[%s1073_s16 + $0x230] sm:$0xff] }
  0xc9   : > { %544 = vst [vmem:[%s1131_s17] sm:$0xff] %v304_v51  ;;  %v241_v51 = vld [vmem:[%s1073_s16 + $0x288] sm:$0xff] }
  0xca   : > { %452 = vxpose.xlu2.b32.cont [5/16] %v241_v51, 128  ;;  %v275_v51 = vld [vmem:[%s1073_s16 + $0x398] sm:$0xff] }
  0xcb   : > { %421 = vxpose.xlu1.b32.cont [6/16] %v244_v52, 128  ;;  %389 = vxpose.xlu0.b32.cont [6/16] %v183_v53, 128  ;;  %v369_v52 = vpop.trf.xlu2 }
  0xcc   : > { %610 = vst [vmem:[%s1131_s17 + $0x210] sm:$0xff] %v369_v52  ;;  %v274_v52 = vld [vmem:[%s1073_s16 + $0x390] sm:$0xff] }
  0xcf   : > { %v337_v55 = vpop.trf.xlu1  ;;  %v305_v56 = vpop.trf.xlu0 }
  0xd0   : > { %578 = vst [vmem:[%s1131_s17 + $0x110] sm:$0xff] %v337_v55  ;;  %v235_v55 = vld [vmem:[%s1073_s16 + $0x258] sm:$0xff] }
  0xd1   : > { %546 = vst [vmem:[%s1131_s17 + $0x10] sm:$0xff] %v305_v56  ;;  %v234_v56 = vld [vmem:[%s1073_s16 + $0x250] sm:$0xff] }
  0xd3   : > { %422 = vxpose.xlu1.b32.cont [7/16] %v248_v57, 128  ;;  %390 = vxpose.xlu0.b32.cont [7/16] %v187_v58, 128  ;;  %v245_v57 = vld [vmem:[%s1073_s16 + $0x2a8] sm:$0xff]  ;;  %v370_v58 = vpop.trf.xlu2 }
  0xd4   : > { %453 = vxpose.xlu2.b32.cont [6/16] %v245_v57, 128  ;;  %612 = vst [vmem:[%s1131_s17 + $0x220] sm:$0xff] %v370_v58  ;;  %v279_v57 = vld [vmem:[%s1073_s16 + $0x3b8] sm:$0xff]  ;;  %v278_v58 = vld [vmem:[%s1073_s16 + $0x3b0] sm:$0xff] }
  0xd7   : > { %v338_v60 = vpop.trf.xlu1  ;;  %v306_v61 = vpop.trf.xlu0 }
  0xd8   : > { %580 = vst [vmem:[%s1131_s17 + $0x120] sm:$0xff] %v338_v60 }
  0xd9   : > { %548 = vst [vmem:[%s1131_s17 + $0x20] sm:$0xff] %v306_v61  ;;  %v239_v61 = vld [vmem:[%s1073_s16 + $0x278] sm:$0xff] }
  0xdb   : > { %423 = vxpose.xlu1.b32.cont [8/16] %v252_v62, 128  ;;  %391 = vxpose.xlu0.b32.cont [8/16] %v191_v63, 128  ;;  %v238_v62 = vld [vmem:[%s1073_s16 + $0x270] sm:$0xff]  ;;  %v249_v63 = vld [vmem:[%s1073_s16 + $0x2c8] sm:$0xff]  ;;  %v371_v0 = vpop.trf.xlu2 }
  0xdc   : > { %454 = vxpose.xlu2.b32.cont [7/16] %v249_v63, 128  ;;  %614 = vst [vmem:[%s1131_s17 + $0x230] sm:$0xff] %v371_v0  ;;  %v282_v63 = vld [vmem:[%s1073_s16 + $0x3d0] sm:$0xff] }
  0xdf   : > { %v339_v1 = vpop.trf.xlu1  ;;  %v307_v2 = vpop.trf.xlu0 }
  0xe0   : > { %582 = vst [vmem:[%s1131_s17 + $0x130] sm:$0xff] %v339_v1 }
  0xe1   : > { %550 = vst [vmem:[%s1131_s17 + $0x30] sm:$0xff] %v307_v2 }
  0xe3   : > { %424 = vxpose.xlu1.b32.cont [9/16] %v256_v3, 128  ;;  %392 = vxpose.xlu0.b32.cont [9/16] %v195_v4, 128  ;;  %v243_v3 = vld [vmem:[%s1073_s16 + $0x298] sm:$0xff]  ;;  %v242_v4 = vld [vmem:[%s1073_s16 + $0x290] sm:$0xff] }
  0xe4   : > { %455 = vxpose.xlu2.b32.cont [8/16] %v253_v5, 128 }
  0xe7   : > { %v340_v6 = vpop.trf.xlu1  ;;  %v308_v7 = vpop.trf.xlu0 }
  0xe8   : > { %584 = vst [vmem:[%s1131_s17 + $0x140] sm:$0xff] %v340_v6  ;;  %v372_v6 = vpop.trf.xlu2 }
  0xe9   : > { %552 = vst [vmem:[%s1131_s17 + $0x40] sm:$0xff] %v308_v7 }
  0xea   : > { %616 = vst [vmem:[%s1131_s17 + $0x240] sm:$0xff] %v372_v6 }
  0xeb   : > { %425 = vxpose.xlu1.b32.cont [10/16] %v260_v8, 128  ;;  %393 = vxpose.xlu0.b32.cont [10/16] %v199_v9, 128  ;;  %v247_v9 = vld [vmem:[%s1073_s16 + $0x2b8] sm:$0xff] }
  0xef   : > { %v341_v11 = vpop.trf.xlu1  ;;  %v309_v12 = vpop.trf.xlu0 }
  0xf0   : > { %586 = vst [vmem:[%s1131_s17 + $0x150] sm:$0xff] %v341_v11  ;;  %v257_v11 = vld [vmem:[%s1073_s16 + $0x308] sm:$0xff] }
  0xf1   : > { %554 = vst [vmem:[%s1131_s17 + $0x50] sm:$0xff] %v309_v12  ;;  %456 = vxpose.xlu2.b32.cont [9/16] %v257_v11, 128  ;;  %v373_v12 = vpop.trf.xlu2 }
  0xf2   : > { %618 = vst [vmem:[%s1131_s17 + $0x250] sm:$0xff] %v373_v12 }
  0xf3   : > { %426 = vxpose.xlu1.b32.cont [11/16] %v264_v13, 128  ;;  %394 = vxpose.xlu0.b32.cont [11/16] %v203_v14, 128 }
  0xf7   : > { %v342_v16 = vpop.trf.xlu1  ;;  %v310_v17 = vpop.trf.xlu0 }
  0xf8   : > { %588 = vst [vmem:[%s1131_s17 + $0x160] sm:$0xff] %v342_v16  ;;  %v250_v16 = vld [vmem:[%s1073_s16 + $0x2d0] sm:$0xff] }
  0xf9   : > { %556 = vst [vmem:[%s1131_s17 + $0x60] sm:$0xff] %v310_v17  ;;  %v261_v17 = vld [vmem:[%s1073_s16 + $0x328] sm:$0xff] }
  0xfa   : > { %457 = vxpose.xlu2.b32.cont [10/16] %v261_v17, 128 }
  0xfb   : > { %427 = vxpose.xlu1.b32.cont [12/16] %v268_v18, 128  ;;  %395 = vxpose.xlu0.b32.cont [12/16] %v207_v19, 128  ;;  %v374_v18 = vpop.trf.xlu2 }
  0xfc   : > { %620 = vst [vmem:[%s1131_s17 + $0x260] sm:$0xff] %v374_v18 }
  0xff   : > { %v343_v21 = vpop.trf.xlu1  ;;  %v311_v22 = vpop.trf.xlu0 }
 0x100   : > { %590 = vst [vmem:[%s1131_s17 + $0x170] sm:$0xff] %v343_v21  ;;  %v255_v21 = vld [vmem:[%s1073_s16 + $0x2f8] sm:$0xff] }
 0x101   : > { %558 = vst [vmem:[%s1131_s17 + $0x70] sm:$0xff] %v311_v22  ;;  %v254_v22 = vld [vmem:[%s1073_s16 + $0x2f0] sm:$0xff] }
 0x103   : > { %428 = vxpose.xlu1.b32.cont [13/16] %v272_v23, 128  ;;  %396 = vxpose.xlu0.b32.cont [13/16] %v211_v24, 128  ;;  %v265_v23 = vld [vmem:[%s1073_s16 + $0x348] sm:$0xff]  ;;  %v375_v24 = vpop.trf.xlu2 }
 0x104   : > { %458 = vxpose.xlu2.b32.cont [11/16] %v265_v23, 128  ;;  %622 = vst [vmem:[%s1131_s17 + $0x270] sm:$0xff] %v375_v24 }
 0x107   : > { %v344_v26 = vpop.trf.xlu1  ;;  %v312_v27 = vpop.trf.xlu0 }
 0x108   : > { %592 = vst [vmem:[%s1131_s17 + $0x180] sm:$0xff] %v344_v26 }
 0x109   : > { %560 = vst [vmem:[%s1131_s17 + $0x80] sm:$0xff] %v312_v27  ;;  %v259_v27 = vld [vmem:[%s1073_s16 + $0x318] sm:$0xff] }
 0x10b   : > { %429 = vxpose.xlu1.b32.cont [14/16] %v276_v28, 128  ;;  %397 = vxpose.xlu0.b32.cont [14/16] %v215_v29, 128  ;;  %v258_v28 = vld [vmem:[%s1073_s16 + $0x310] sm:$0xff]  ;;  %v269_v29 = vld [vmem:[%s1073_s16 + $0x368] sm:$0xff]  ;;  %v376_v30 = vpop.trf.xlu2 }
 0x10c   : > { %459 = vxpose.xlu2.b32.cont [12/16] %v269_v29, 128  ;;  %624 = vst [vmem:[%s1131_s17 + $0x280] sm:$0xff] %v376_v30 }
 0x10f   : > { %v345_v31 = vpop.trf.xlu1  ;;  %v313_v32 = vpop.trf.xlu0 }
 0x110   : > { %594 = vst [vmem:[%s1131_s17 + $0x190] sm:$0xff] %v345_v31 }
 0x111   : > { %562 = vst [vmem:[%s1131_s17 + $0x90] sm:$0xff] %v313_v32 }
 0x113   : > { %430 = vxpose.xlu1.b32.cont [15/16] %v280_v33, 128  ;;  %398 = vxpose.xlu0.b32.cont [15/16] %v219_v34, 128  ;;  %v263_v33 = vld [vmem:[%s1073_s16 + $0x338] sm:$0xff]  ;;  %v262_v34 = vld [vmem:[%s1073_s16 + $0x330] sm:$0xff] }
 0x114   : > { %460 = vxpose.xlu2.b32.cont [13/16] %v273_v35, 128 }
 0x117   : > { %v346_v36 = vpop.trf.xlu1  ;;  %v314_v37 = vpop.trf.xlu0 }
 0x118   : > { %596 = vst [vmem:[%s1131_s17 + $0x1a0] sm:$0xff] %v346_v36  ;;  %v377_v36 = vpop.trf.xlu2 }
 0x119   : > { %564 = vst [vmem:[%s1131_s17 + $0xa0] sm:$0xff] %v314_v37 }
 0x11a   : > { %626 = vst [vmem:[%s1131_s17 + $0x290] sm:$0xff] %v377_v36 }
 0x11b   : > { %431 = vxpose.xlu1.b32.end [16/16] %v284_v38, 128  ;;  %399 = vxpose.xlu0.b32.end [16/16] %v223_v39, 128  ;;  %v267_v39 = vld [vmem:[%s1073_s16 + $0x358] sm:$0xff] }
 0x11f   : > { %v347_v41 = vpop.trf.xlu1  ;;  %v315_v42 = vpop.trf.xlu0 }
 0x120   : > { %598 = vst [vmem:[%s1131_s17 + $0x1b0] sm:$0xff] %v347_v41  ;;  %v277_v41 = vld [vmem:[%s1073_s16 + $0x3a8] sm:$0xff] }
 0x121   : > { %566 = vst [vmem:[%s1131_s17 + $0xb0] sm:$0xff] %v315_v42  ;;  %461 = vxpose.xlu2.b32.cont [14/16] %v277_v41, 128  ;;  %v378_v42 = vpop.trf.xlu2 }
 0x122   : > { %628 = vst [vmem:[%s1131_s17 + $0x2a0] sm:$0xff] %v378_v42 }
 0x123   : > { %512 = vxpose.xlu1.b32.start [1/16] %v227_v43, 128  ;;  %480 = vxpose.xlu0.b32.start [1/16] %v226_v44, 128 }
 0x127   : > { %v348_v47 = vpop.trf.xlu1  ;;  %v316_v48 = vpop.trf.xlu0 }
 0x128   : > { %600 = vst [vmem:[%s1131_s17 + $0x1c0] sm:$0xff] %v348_v47  ;;  %v281_v47 = vld [vmem:[%s1073_s16 + $0x3c8] sm:$0xff] }
 0x129   : > { %568 = vst [vmem:[%s1131_s17 + $0xc0] sm:$0xff] %v316_v48  ;;  %462 = vxpose.xlu2.b32.cont [15/16] %v281_v47, 128  ;;  %v379_v48 = vpop.trf.xlu2 }
 0x12a   : > { %630 = vst [vmem:[%s1131_s17 + $0x2b0] sm:$0xff] %v379_v48 }
 0x12b   : > { %513 = vxpose.xlu1.b32.cont [2/16] %v231_v49, 128  ;;  %481 = vxpose.xlu0.b32.cont [2/16] %v230_v50, 128 }
 0x12f   : > { %v349_v53 = vpop.trf.xlu1  ;;  %v317_v54 = vpop.trf.xlu0 }
 0x130   : > { %602 = vst [vmem:[%s1131_s17 + $0x1d0] sm:$0xff] %v349_v53  ;;  %v285_v53 = vld [vmem:[%s1073_s16 + $0x3e8] sm:$0xff] }
 0x131   : > { %570 = vst [vmem:[%s1131_s17 + $0xd0] sm:$0xff] %v317_v54  ;;  %463 = vxpose.xlu2.b32.end [16/16] %v285_v53, 128  ;;  %v380_v54 = vpop.trf.xlu2 }
 0x132   : > { %632 = vst [vmem:[%s1131_s17 + $0x2c0] sm:$0xff] %v380_v54 }
 0x133   : > { %514 = vxpose.xlu1.b32.cont [3/16] %v235_v55, 128  ;;  %482 = vxpose.xlu0.b32.cont [3/16] %v234_v56, 128 }
 0x137   : > { %v350_v59 = vpop.trf.xlu1  ;;  %v318_v60 = vpop.trf.xlu0 }
 0x138   : > { %604 = vst [vmem:[%s1131_s17 + $0x1e0] sm:$0xff] %v350_v59 }
 0x139   : > { %572 = vst [vmem:[%s1131_s17 + $0xe0] sm:$0xff] %v318_v60  ;;  %v381_v59 = vpop.trf.xlu2 }
 0x13a   : > { %634 = vst [vmem:[%s1131_s17 + $0x2d0] sm:$0xff] %v381_v59 }
 0x13b   : > { %515 = vxpose.xlu1.b32.cont [4/16] %v239_v61, 128  ;;  %483 = vxpose.xlu0.b32.cont [4/16] %v238_v62, 128  ;;  %v283_v62 = vld [vmem:[%s1073_s16 + $0x3d8] sm:$0xff] }
 0x13f   : > { %v351_v1 = vpop.trf.xlu1  ;;  %v319_v2 = vpop.trf.xlu0 }
 0x140   : > { %606 = vst [vmem:[%s1131_s17 + $0x1f0] sm:$0xff] %v351_v1 }
 0x141   : > { %574 = vst [vmem:[%s1131_s17 + $0xf0] sm:$0xff] %v319_v2  ;;  %v382_v0 = vpop.trf.xlu2 }
 0x142   : > { %636 = vst [vmem:[%s1131_s17 + $0x2e0] sm:$0xff] %v382_v0 }
 0x143   : > { %516 = vxpose.xlu1.b32.cont [5/16] %v243_v3, 128  ;;  %484 = vxpose.xlu0.b32.cont [5/16] %v242_v4, 128  ;;  %v287_v3 = vld [vmem:[%s1073_s16 + $0x3f8] sm:$0xff]  ;;  %v286_v4 = vld [vmem:[%s1073_s16 + $0x3f0] sm:$0xff] }
 0x147   : > { %v432_v7 = vpop.trf.xlu1  ;;  %v400_v8 = vpop.trf.xlu0 }
 0x148   : > { %545 = vst [vmem:[%s1131_s17 + $0x8] sm:$0xff] %v432_v7 }
 0x149   : > { %640 = vst [vmem:[%s1131_s17 + $0x300] sm:$0xff] %v400_v8  ;;  %v383_v5 = vpop.trf.xlu2 }
 0x14a   : > { %638 = vst [vmem:[%s1131_s17 + $0x2f0] sm:$0xff] %v383_v5 }
 0x14b   : > { %517 = vxpose.xlu1.b32.cont [6/16] %v247_v9, 128  ;;  %485 = vxpose.xlu0.b32.cont [6/16] %v246_v10, 128 }
 0x14f   : > { %v433_v13 = vpop.trf.xlu1  ;;  %v401_v14 = vpop.trf.xlu0 }
 0x150   : > { %547 = vst [vmem:[%s1131_s17 + $0x18] sm:$0xff] %v433_v13 }
 0x151   : > { %642 = vst [vmem:[%s1131_s17 + $0x310] sm:$0xff] %v401_v14 }
 0x152   : > { %v464_v8 = vpop.trf.xlu2 }
 0x153   : > { %518 = vxpose.xlu1.b32.cont [7/16] %v251_v15, 128  ;;  %486 = vxpose.xlu0.b32.cont [7/16] %v250_v16, 128  ;;  %577 = vst [vmem:[%s1131_s17 + $0x108] sm:$0xff] %v464_v8 }
 0x157   : > { %v434_v19 = vpop.trf.xlu1  ;;  %v402_v20 = vpop.trf.xlu0 }
 0x158   : > { %549 = vst [vmem:[%s1131_s17 + $0x28] sm:$0xff] %v434_v19 }
 0x159   : > { %644 = vst [vmem:[%s1131_s17 + $0x320] sm:$0xff] %v402_v20 }
 0x15a   : > { %v465_v11 = vpop.trf.xlu2 }
 0x15b   : > { %519 = vxpose.xlu1.b32.cont [8/16] %v255_v21, 128  ;;  %487 = vxpose.xlu0.b32.cont [8/16] %v254_v22, 128  ;;  %579 = vst [vmem:[%s1131_s17 + $0x118] sm:$0xff] %v465_v11 }
 0x15f   : > { %v435_v25 = vpop.trf.xlu1  ;;  %v403_v26 = vpop.trf.xlu0 }
 0x160   : > { %551 = vst [vmem:[%s1131_s17 + $0x38] sm:$0xff] %v435_v25 }
 0x161   : > { %646 = vst [vmem:[%s1131_s17 + $0x330] sm:$0xff] %v403_v26 }
 0x162   : > { %v466_v14 = vpop.trf.xlu2 }
 0x163   : > { %520 = vxpose.xlu1.b32.cont [9/16] %v259_v27, 128  ;;  %488 = vxpose.xlu0.b32.cont [9/16] %v258_v28, 128  ;;  %581 = vst [vmem:[%s1131_s17 + $0x128] sm:$0xff] %v466_v14 }
 0x167   : > { %v436_v31 = vpop.trf.xlu1  ;;  %v404_v32 = vpop.trf.xlu0 }
 0x168   : > { %553 = vst [vmem:[%s1131_s17 + $0x48] sm:$0xff] %v436_v31 }
 0x169   : > { %648 = vst [vmem:[%s1131_s17 + $0x340] sm:$0xff] %v404_v32 }
 0x16a   : > { %v467_v17 = vpop.trf.xlu2 }
 0x16b   : > { %521 = vxpose.xlu1.b32.cont [10/16] %v263_v33, 128  ;;  %489 = vxpose.xlu0.b32.cont [10/16] %v262_v34, 128  ;;  %583 = vst [vmem:[%s1131_s17 + $0x138] sm:$0xff] %v467_v17 }
 0x16f   : > { %v437_v37 = vpop.trf.xlu1  ;;  %v405_v38 = vpop.trf.xlu0 }
 0x170   : > { %555 = vst [vmem:[%s1131_s17 + $0x58] sm:$0xff] %v437_v37 }
 0x171   : > { %650 = vst [vmem:[%s1131_s17 + $0x350] sm:$0xff] %v405_v38 }
 0x172   : > { %v468_v20 = vpop.trf.xlu2 }
 0x173   : > { %522 = vxpose.xlu1.b32.cont [11/16] %v267_v39, 128  ;;  %490 = vxpose.xlu0.b32.cont [11/16] %v266_v40, 128  ;;  %585 = vst [vmem:[%s1131_s17 + $0x148] sm:$0xff] %v468_v20 }
 0x177   : > { %v438_v43 = vpop.trf.xlu1  ;;  %v406_v44 = vpop.trf.xlu0 }
 0x178   : > { %557 = vst [vmem:[%s1131_s17 + $0x68] sm:$0xff] %v438_v43 }
 0x179   : > { %652 = vst [vmem:[%s1131_s17 + $0x360] sm:$0xff] %v406_v44 }
 0x17a   : > { %v469_v23 = vpop.trf.xlu2 }
 0x17b   : > { %523 = vxpose.xlu1.b32.cont [12/16] %v271_v45, 128  ;;  %491 = vxpose.xlu0.b32.cont [12/16] %v270_v46, 128  ;;  %587 = vst [vmem:[%s1131_s17 + $0x158] sm:$0xff] %v469_v23 }
 0x17f   : > { %v439_v49 = vpop.trf.xlu1  ;;  %v407_v50 = vpop.trf.xlu0 }
 0x180   : > { %559 = vst [vmem:[%s1131_s17 + $0x78] sm:$0xff] %v439_v49 }
 0x181   : > { %654 = vst [vmem:[%s1131_s17 + $0x370] sm:$0xff] %v407_v50 }
 0x182   : > { %v470_v26 = vpop.trf.xlu2 }
 0x183   : > { %524 = vxpose.xlu1.b32.cont [13/16] %v275_v51, 128  ;;  %492 = vxpose.xlu0.b32.cont [13/16] %v274_v52, 128  ;;  %589 = vst [vmem:[%s1131_s17 + $0x168] sm:$0xff] %v470_v26 }
 0x187   : > { %v440_v55 = vpop.trf.xlu1  ;;  %v408_v56 = vpop.trf.xlu0 }
 0x188   : > { %561 = vst [vmem:[%s1131_s17 + $0x88] sm:$0xff] %v440_v55 }
 0x189   : > { %656 = vst [vmem:[%s1131_s17 + $0x380] sm:$0xff] %v408_v56 }
 0x18a   : > { %v471_v29 = vpop.trf.xlu2 }
 0x18b   : > { %525 = vxpose.xlu1.b32.cont [14/16] %v279_v57, 128  ;;  %493 = vxpose.xlu0.b32.cont [14/16] %v278_v58, 128  ;;  %591 = vst [vmem:[%s1131_s17 + $0x178] sm:$0xff] %v471_v29 }
 0x18f   : > { %v441_v60 = vpop.trf.xlu1  ;;  %v409_v61 = vpop.trf.xlu0 }
 0x190   : > { %563 = vst [vmem:[%s1131_s17 + $0x98] sm:$0xff] %v441_v60 }
 0x191   : > { %658 = vst [vmem:[%s1131_s17 + $0x390] sm:$0xff] %v409_v61 }
 0x192   : > { %v472_v32 = vpop.trf.xlu2 }
 0x193   : > { %526 = vxpose.xlu1.b32.cont [15/16] %v283_v62, 128  ;;  %494 = vxpose.xlu0.b32.cont [15/16] %v282_v63, 128  ;;  %593 = vst [vmem:[%s1131_s17 + $0x188] sm:$0xff] %v472_v32 }
 0x197   : > { %v442_v1 = vpop.trf.xlu1  ;;  %v410_v2 = vpop.trf.xlu0 }
 0x198   : > { %565 = vst [vmem:[%s1131_s17 + $0xa8] sm:$0xff] %v442_v1 }
 0x199   : > { %660 = vst [vmem:[%s1131_s17 + $0x3a0] sm:$0xff] %v410_v2 }
 0x19a   : > { %v473_v35 = vpop.trf.xlu2 }
 0x19b   : > { %527 = vxpose.xlu1.b32.end [16/16] %v287_v3, 128  ;;  %495 = vxpose.xlu0.b32.end [16/16] %v286_v4, 128  ;;  %595 = vst [vmem:[%s1131_s17 + $0x198] sm:$0xff] %v473_v35 }
 0x19f   : > { %v443_v6 = vpop.trf.xlu1  ;;  %v411_v7 = vpop.trf.xlu0 }
 0x1a0   : > { %567 = vst [vmem:[%s1131_s17 + $0xb8] sm:$0xff] %v443_v6 }
 0x1a1   : > { %662 = vst [vmem:[%s1131_s17 + $0x3b0] sm:$0xff] %v411_v7 }
 0x1a2   : > { %v474_v38 = vpop.trf.xlu2 }
 0x1a3   : > { %597 = vst [vmem:[%s1131_s17 + $0x1a8] sm:$0xff] %v474_v38 }
 0x1a7   : > { %v444_v9 = vpop.trf.xlu1  ;;  %v412_v10 = vpop.trf.xlu0 }
 0x1a8   : > { %569 = vst [vmem:[%s1131_s17 + $0xc8] sm:$0xff] %v444_v9 }
 0x1a9   : > { %664 = vst [vmem:[%s1131_s17 + $0x3c0] sm:$0xff] %v412_v10 }
 0x1aa   : > { %v475_v41 = vpop.trf.xlu2 }
 0x1ab   : > { %599 = vst [vmem:[%s1131_s17 + $0x1b8] sm:$0xff] %v475_v41 }
 0x1af   : > { %v445_v12 = vpop.trf.xlu1  ;;  %v413_v13 = vpop.trf.xlu0 }
 0x1b0   : > { %571 = vst [vmem:[%s1131_s17 + $0xd8] sm:$0xff] %v445_v12 }
 0x1b1   : > { %666 = vst [vmem:[%s1131_s17 + $0x3d0] sm:$0xff] %v413_v13 }
 0x1b2   : > { %v476_v44 = vpop.trf.xlu2 }
 0x1b3   : > { %601 = vst [vmem:[%s1131_s17 + $0x1c8] sm:$0xff] %v476_v44 }
 0x1b7   : > { %v446_v15 = vpop.trf.xlu1  ;;  %v414_v16 = vpop.trf.xlu0 }
 0x1b8   : > { %573 = vst [vmem:[%s1131_s17 + $0xe8] sm:$0xff] %v446_v15 }
 0x1b9   : > { %668 = vst [vmem:[%s1131_s17 + $0x3e0] sm:$0xff] %v414_v16 }
 0x1ba   : > { %v477_v47 = vpop.trf.xlu2 }
 0x1bb   : > { %603 = vst [vmem:[%s1131_s17 + $0x1d8] sm:$0xff] %v477_v47 }
 0x1bf   : > { %v447_v18 = vpop.trf.xlu1  ;;  %v415_v19 = vpop.trf.xlu0 }
 0x1c0   : > { %575 = vst [vmem:[%s1131_s17 + $0xf8] sm:$0xff] %v447_v18 }
 0x1c1   : > { %670 = vst [vmem:[%s1131_s17 + $0x3f0] sm:$0xff] %v415_v19 }
 0x1c2   : > { %v478_v50 = vpop.trf.xlu2 }
 0x1c3   : > { %605 = vst [vmem:[%s1131_s17 + $0x1e8] sm:$0xff] %v478_v50 }
 0x1c7   : > { %v528_v21 = vpop.trf.xlu1  ;;  %v496_v22 = vpop.trf.xlu0 }
 0x1c8   : > { %641 = vst [vmem:[%s1131_s17 + $0x308] sm:$0xff] %v528_v21 }
 0x1c9   : > { %609 = vst [vmem:[%s1131_s17 + $0x208] sm:$0xff] %v496_v22 }
 0x1ca   : > { %v479_v53 = vpop.trf.xlu2 }
 0x1cb   : > { %607 = vst [vmem:[%s1131_s17 + $0x1f8] sm:$0xff] %v479_v53 }
 0x1cf   : > { %v529_v24 = vpop.trf.xlu1  ;;  %v497_v25 = vpop.trf.xlu0 }
 0x1d0   : > { %643 = vst [vmem:[%s1131_s17 + $0x318] sm:$0xff] %v529_v24 }
 0x1d1   : > { %611 = vst [vmem:[%s1131_s17 + $0x218] sm:$0xff] %v497_v25 }
 0x1d7   : > { %v530_v27 = vpop.trf.xlu1  ;;  %v498_v28 = vpop.trf.xlu0 }
 0x1d8   : > { %645 = vst [vmem:[%s1131_s17 + $0x328] sm:$0xff] %v530_v27 }
 0x1d9   : > { %613 = vst [vmem:[%s1131_s17 + $0x228] sm:$0xff] %v498_v28 }
 0x1df   : > { %v531_v30 = vpop.trf.xlu1  ;;  %v499_v31 = vpop.trf.xlu0 }
 0x1e0   : > { %647 = vst [vmem:[%s1131_s17 + $0x338] sm:$0xff] %v531_v30 }
 0x1e1   : > { %615 = vst [vmem:[%s1131_s17 + $0x238] sm:$0xff] %v499_v31 }
 0x1e7   : > { %v532_v33 = vpop.trf.xlu1  ;;  %v500_v34 = vpop.trf.xlu0 }
 0x1e8   : > { %649 = vst [vmem:[%s1131_s17 + $0x348] sm:$0xff] %v532_v33 }
 0x1e9   : > { %617 = vst [vmem:[%s1131_s17 + $0x248] sm:$0xff] %v500_v34 }
 0x1ef   : > { %v533_v36 = vpop.trf.xlu1  ;;  %v501_v37 = vpop.trf.xlu0 }
 0x1f0   : > { %651 = vst [vmem:[%s1131_s17 + $0x358] sm:$0xff] %v533_v36 }
 0x1f1   : > { %619 = vst [vmem:[%s1131_s17 + $0x258] sm:$0xff] %v501_v37 }
 0x1f7   : > { %v534_v39 = vpop.trf.xlu1  ;;  %v502_v40 = vpop.trf.xlu0 }
 0x1f8   : > { %653 = vst [vmem:[%s1131_s17 + $0x368] sm:$0xff] %v534_v39 }
 0x1f9   : > { %621 = vst [vmem:[%s1131_s17 + $0x268] sm:$0xff] %v502_v40 }
 0x1ff   : > { %v535_v42 = vpop.trf.xlu1  ;;  %v503_v43 = vpop.trf.xlu0 }
 0x200   : > { %655 = vst [vmem:[%s1131_s17 + $0x378] sm:$0xff] %v535_v42 }
 0x201   : > { %623 = vst [vmem:[%s1131_s17 + $0x278] sm:$0xff] %v503_v43 }
 0x207   : > { %v536_v45 = vpop.trf.xlu1  ;;  %v504_v46 = vpop.trf.xlu0 }
 0x208   : > { %657 = vst [vmem:[%s1131_s17 + $0x388] sm:$0xff] %v536_v45 }
 0x209   : > { %625 = vst [vmem:[%s1131_s17 + $0x288] sm:$0xff] %v504_v46 }
 0x20f   : > { %v537_v48 = vpop.trf.xlu1  ;;  %v505_v49 = vpop.trf.xlu0 }
 0x210   : > { %659 = vst [vmem:[%s1131_s17 + $0x398] sm:$0xff] %v537_v48 }
 0x211   : > { %627 = vst [vmem:[%s1131_s17 + $0x298] sm:$0xff] %v505_v49 }
 0x217   : > { %v538_v51 = vpop.trf.xlu1  ;;  %v506_v52 = vpop.trf.xlu0 }
 0x218   : > { %661 = vst [vmem:[%s1131_s17 + $0x3a8] sm:$0xff] %v538_v51 }
 0x219   : > { %629 = vst [vmem:[%s1131_s17 + $0x2a8] sm:$0xff] %v506_v52 }
 0x21f   : > { %v539_v54 = vpop.trf.xlu1  ;;  %v507_v55 = vpop.trf.xlu0 }
 0x220   : > { %663 = vst [vmem:[%s1131_s17 + $0x3b8] sm:$0xff] %v539_v54 }
 0x221   : > { %631 = vst [vmem:[%s1131_s17 + $0x2b8] sm:$0xff] %v507_v55 }
 0x227   : > { %v540_v56 = vpop.trf.xlu1  ;;  %v508_v57 = vpop.trf.xlu0 }
 0x228   : > { %665 = vst [vmem:[%s1131_s17 + $0x3c8] sm:$0xff] %v540_v56 }
 0x229   : > { %633 = vst [vmem:[%s1131_s17 + $0x2c8] sm:$0xff] %v508_v57 }
 0x22f   : > { %v541_v58 = vpop.trf.xlu1  ;;  %v509_v59 = vpop.trf.xlu0 }
 0x230   : > { %667 = vst [vmem:[%s1131_s17 + $0x3d8] sm:$0xff] %v541_v58 }
 0x231   : > { %635 = vst [vmem:[%s1131_s17 + $0x2d8] sm:$0xff] %v509_v59 }
 0x237   : > { %v542_v60 = vpop.trf.xlu1  ;;  %v510_v61 = vpop.trf.xlu0 }
 0x238   : > { %669 = vst [vmem:[%s1131_s17 + $0x3e8] sm:$0xff] %v542_v60 }
 0x239   : > { %637 = vst [vmem:[%s1131_s17 + $0x2e8] sm:$0xff] %v510_v61 }
 0x23f   : > { %v543_v62 = vpop.trf.xlu1  ;;  %v511_v63 = vpop.trf.xlu0 }
 0x240   : > { %671 = vst [vmem:[%s1131_s17 + $0x3f8] sm:$0xff] %v543_v62 }
 0x241   : > { %639 = vst [vmem:[%s1131_s17 + $0x2f8] sm:$0xff] %v511_v63 }
 0x242   : > { %921 = shalt.err (!%p918_p13)
}
 0x243   : > { %s981_s5 = smov 256   ;;  %s982_s12 = smov 16  }
 0x244   : > { %799 = dma.vmem_to_hbm [thread:$0]  (%p1044_p9), %s689_s25, 16384, %s691_s26, %s673_s27, %s981_s5, %s981_s5, %s982_s12  }
 0x245 PF: > { %s705_s13 = sand.u32 1, %s956_s6   ;;  %p806_p0 = pnand %p781_p12, %p1051_p11 }
 0x246   : > { %s706_s15 = scalar_lea.sflag [#allocation4], %s705_s13 }
 0x247   : > { %p807_p1 = pneg %p806_p0 }
 0x249   : > { %951 = dma.done.wait (%p807_p1), %s706_s15, 16384  }
 0x24a   : > { %953 = vsyncadd (%p807_p1), %s706_s15, 4294950912  ;;  %s17_s11 = sadd.s32 1, %s976_s11   ;;  %s1384_s6 = smov %s960_s7 }
 0x24b   : > { %p14_p2 = scmp.ge.s32.totalorder %s17_s11, 4   ;;  %s1385_s7 = smov %s964_s8 }
 0x24c   : > { %s1386_s8 = smov %s1049_s20  ;;  %s1387_s9 = smov %s972_s10 }
 0x24d   : > { %s1388_s10 = smov %s1390_s14  ;;  %16 = sbr.rel (!%p14_p2) target bundleno = 6 (0x6), region = 69 }
 0x252   :  { %712 = vsyncpa [#allocation3], 1 }
 0x253   :  { %714 = vsyncpa [#allocation3 + $0x1], 1 }
 0x254   :  { %715 = vsyncpa [#allocation4], 1 }
 0x255   :  { %717 = vsyncpa [#allocation4 + $0x1], 1 }

</bundles_post_ra>
